<compile_context>
chip_gen: v5e
topology: v5e:2x2
jax: 0.10.0
libtpu: 0.0.40
codegen_flags: <defaults>
</compile_context>

<pallas_src>
import functools

import jax
import jax.numpy as jnp
from jax import lax
from jax.experimental import pallas as pl
from jax.experimental.pallas import tpu as pltpu


def _colsum_kernel(x_ref, o_ref, *, valid_rows, has_tail):
    """One grid step: (tm, Np) input tile -> (8, Np) sublane-dense partial column sums."""
    xf = x_ref[...].astype(jnp.float32)          # native dtype streamed from HBM, cast here
    tm, np_w = xf.shape
    if has_tail:
        # Ragged last tile (no wrapper-side pad): rows past the true packed-row count
        # hold unspecified data; zero them.  Whole packed rows are valid or invalid
        # (wrapper guarantees M % pack == 0), so a per-row mask is exact and avoids
        # any flat-index int32 overflow for huge states.
        row = lax.broadcasted_iota(jnp.int32, (tm, np_w), 0) + pl.program_id(0) * tm
        xf = jnp.where(row < valid_rows, xf, jnp.float32(0.0))
    # Sublane-aligned partial reduce (pure VPU adds); 8 -> 1 fold happens once in the
    # wrapper finalize.
    o_ref[...] = jnp.sum(xf.reshape(tm // 8, 8, np_w), axis=0)


def firing_rate_dist_loss(state, metric="sd"):
    """state: (T, B, N). Returns a scalar float32, matching FiringRateDistLoss.forward."""
    assert metric in ("sd", "cv", "mean_ad", "max_ad")
    T, B, N = state.shape
    M = T * B
    itemsize = jnp.dtype(state.dtype).itemsize
    row_align = max(8, 32 // itemsize)           # 8 for f32, 16 for bf16, 32 for int8

    # Lane-packing factor (power of two since N divides 128).  Reduce k until every
    # packed row is whole (M % k == 0) and there is at least one aligned sublane group.
    k = 1
    if N < 128 and 128 % N == 0:
        k = 128 // N
        while k > 1 and (M % k != 0 or (M // k) < row_align):
            k //= 2
        if M % k != 0:
            k = 1
    Np = k * N
    Mp = M // k                                   # valid packed rows (all whole rows)

    x = state.reshape(M, N)                       # free major-dim merge
    xp = x.reshape(Mp, Np) if k > 1 else x        # row-major lane fold, no zero-pad copy

    # Tiny-input fallback only: if the whole packed array is smaller than one aligned
    # sublane group, pad it up (zeros are exact for column sums; cost is negligible
    # because the entire input is < row_align rows).
    rows = Mp
    if rows < row_align:
        xp = jnp.pad(xp, ((0, row_align - rows), (0, 0)))
        rows = row_align

    # Row tile from a VMEM budget: ~8 MiB per input buffer (double-buffered by the
    # pipeline -> ~16 MiB), amortizing the ~0.35 us per-grid-step overhead on all
    # generations; explicit vmem_limit_bytes keeps v5e's 16 MiB scoped default from
    # rejecting the larger tile.
    per_buf_budget = 8 * 1024 * 1024
    tm = max(row_align, min(per_buf_budget // (Np * itemsize), rows))
    tm = max(row_align, (tm // row_align) * row_align)

    num_tiles = pl.cdiv(rows, tm)
    has_tail = (rows % tm) != 0

    kernel = functools.partial(_colsum_kernel, valid_rows=Mp, has_tail=has_tail)

    out_bytes = num_tiles * 8 * Np * 4
    partials = pl.pallas_call(
        kernel,
        out_shape=jax.ShapeDtypeStruct((num_tiles * 8, Np), jnp.float32),
        grid_spec=pltpu.PrefetchScalarGridSpec(
            num_scalar_prefetch=0,
            grid=(num_tiles,),
            in_specs=[pl.BlockSpec((tm, Np), lambda i: (i, 0))],
            out_specs=pl.BlockSpec((8, Np), lambda i: (i, 0)),
        ),
        compiler_params=pltpu.CompilerParams(
            # No carried state -> grid axis is truly parallel; on v7x Mosaic shards the
            # row stream across both TensorCores.  Near-zero effect on v5e/v6e (1 TC).
            dimension_semantics=("parallel",),
            vmem_limit_bytes=40 * 1024 * 1024,
        ),
        cost_estimate=pl.CostEstimate(
            flops=2 * M * N,
            transcendentals=0,
            bytes_accessed=M * N * itemsize + out_bytes,
        ),
    )(xp)

    # Finalize on ~num_tiles*8*Np values (negligible vs the streamed input): fold the
    # per-tile/sublane partials, fold the lane-pack groups back onto the N neurons,
    # take the per-neuron mean and compute the scalar dispersion metric.
    col = jnp.sum(partials, axis=0)                                   # (Np,)
    mean_fr = jnp.sum(col.reshape(k, N), axis=0) / jnp.float32(M)     # (N,)
    avg = jnp.mean(mean_fr)
    dev = mean_fr - avg
    if metric == "sd":
        # torch.std default: unbiased (Bessel, divide by N-1).
        return jnp.sqrt(jnp.sum(dev * dev) / jnp.float32(N - 1))
    if metric == "cv":
        return jnp.sqrt(jnp.sum(dev * dev) / jnp.float32(N - 1)) / avg
    if metric == "mean_ad":
        return jnp.mean(jnp.abs(dev))
    return jnp.max(jnp.abs(dev))                                      # 'max_ad'


def _reference(state, metric):
    mean_fr = jnp.mean(state.astype(jnp.float32), axis=(0, 1))
    avg = jnp.mean(mean_fr)
    if metric == "sd":
        return jnp.std(mean_fr, ddof=1)
    if metric == "cv":
        return jnp.std(mean_fr, ddof=1) / avg
    if metric == "mean_ad":
        return jnp.mean(jnp.abs(mean_fr - avg))
    return jnp.max(jnp.abs(mean_fr - avg))


if __name__ == "__main__":
    key = jax.random.PRNGKey(0)
    T, B, N = 8, 2, 32  # time, batch, hidden neurons
    state = jax.random.uniform(key, (T, B, N), dtype=jnp.float32)

    for metric in ("sd", "cv", "mean_ad", "max_ad"):
        val = jax.block_until_ready(firing_rate_dist_loss(state, metric=metric))
        ref = _reference(state, metric)
        assert jnp.allclose(val, ref, rtol=1e-5, atol=1e-6), (metric, val, ref)

    # bf16 input exercises the in-kernel cast path (native dtype streamed from HBM).
    state_bf16 = state.astype(jnp.bfloat16)
    val = jax.block_until_ready(firing_rate_dist_loss(state_bf16, metric="sd"))
    ref = _reference(state_bf16, "sd")
    assert jnp.allclose(val, ref, rtol=1e-3, atol=1e-5), ("sd/bf16", val, ref)

    # A shape whose row count does not divide the tile exercises the in-kernel
    # ragged-tail mask (the path that replaced the wrapper-side jnp.pad).
    state2 = jax.random.uniform(jax.random.PRNGKey(1), (7, 3, 32), dtype=jnp.float32)
    val = jax.block_until_ready(firing_rate_dist_loss(state2, metric="cv"))
    ref = _reference(state2, "cv")
    assert jnp.allclose(val, ref, rtol=1e-5, atol=1e-6), ("cv/ragged", val, ref)

    print("KERNEL_OK")
</pallas_src>

<mosaic_0001>
module attributes {stable_mosaic.version = 11 : i64} {
  func.func @_colsum_kernel(%arg0: i32, %arg1: memref<8x64xf32, #tpu.memory_space<vmem>>, %arg2: memref<8x64xf32, #tpu.memory_space<vmem>>) attributes {dimension_semantics = [#tpu.dimension_semantics<parallel>], iteration_bounds = array<i64: 1>, scalar_prefetch = 0 : i64, scratch_operands = 0 : i64, tpu.core_type = #tpu.core_type<tc>, window_params = [{transform_indices = @transform_0, window_bounds = array<i64: 8, 64>}, {transform_indices = @transform_1, window_bounds = array<i64: 8, 64>}]} {
    %c0 = arith.constant 0 : index
    %c0_0 = arith.constant 0 : index
    %0 = vector.load %arg1[%c0, %c0_0] : memref<8x64xf32, #tpu.memory_space<vmem>>, vector<8x64xf32>
    %1 = vector.shape_cast %0 : vector<8x64xf32> to vector<1x8x64xf32>
    %cst = arith.constant dense<0.000000e+00> : vector<8x64xf32>
    %2 = vector.multi_reduction <add>, %1, %cst [0] : vector<1x8x64xf32> to vector<8x64xf32>
    %c0_1 = arith.constant 0 : index
    %c0_2 = arith.constant 0 : index
    %3 = vector.load %arg2[%c0_1, %c0_2] : memref<8x64xf32, #tpu.memory_space<vmem>>, vector<8x64xf32>
    tpu.vector_store %arg2[%c0_1, %c0_2], %2 {strides = array<i32>} : memref<8x64xf32, #tpu.memory_space<vmem>>, vector<8x64xf32>,
    return
  }
  func.func @transform_0(%arg0: i32) -> (i32, i32) {
    %c0_i32 = arith.constant 0 : i32
    %c0_i32_0 = arith.constant 0 : i32
    return %arg0, %c0_i32 : i32, i32
  }
  func.func @transform_1(%arg0: i32) -> (i32, i32) {
    %c0_i32 = arith.constant 0 : i32
    %c0_i32_0 = arith.constant 0 : i32
    return %arg0, %c0_i32 : i32, i32
  }
}

</mosaic_0001>

<bundles_post_ra>
// kernel: tpu_custom_call.1
= control target key start
LH: loop header
LB: loop body
LE: loop exit
PB: predicated region body
PF: predicated region fallthrough
CT: control target
= control target key end

     0   :  { %6 = vsyncpa [#allocation3], 0  ;;  %s116_s0 = inlined_call_operand.hbm [shape: f32[8,64], index: 0, kind: input, shape index: {}]   ;;  %s117_s1 = inlined_call_operand.hbm [shape: f32[8,64], index: 1, kind: output, shape index: {}]  }
   0x1   :  { %7 = vsyncpa [#allocation4], 0  ;;  %s13_s8 = sshll.u32 %s116_s0, 4  ;;  %s98_s9 = smov [#allocation2]   ;;  %s14_s8 = int_to_ptr.hbm [resolvable:$true] %s13_s8 }
   0x2   :  { %s15_s10 = sshll.u32 %s98_s9, 4  ;;  %s16_s10 = int_to_ptr.vmem [resolvable:$true] %s15_s10 }
   0x3   :  { %18 = dma.hbm_to_vmem [thread:$0]  %s14_s8, 128, %s16_s10, [#allocation3]  }
   0x4   :  { %94 = dma.done.wait [#allocation3], 128  }
   0x5   :  { %95 = vsyncadd [#allocation3], 4294967168  ;;  %s99_s11 = smov [#allocation5]   ;;  %s34_s15 = sshll.u32 %s117_s1, 4  ;;  %vm25_vm0 = vcmask 523264   ;;  %v23_v0 = vld [vmem:[#allocation2] sm:$0xff]  ;;  %s35_s15 = int_to_ptr.hbm [resolvable:$true] %s34_s15 }
   0x6   :  { %s32_s12 = sshll.u32 %s99_s11, 4  ;;  %26 = vst.msk [vmem:[#allocation5] sm:$0xff] %vm25_vm0, %v23_v0  ;;  %s33_s12 = int_to_ptr.vmem [resolvable:$true] %s32_s12 }
   0x7   :  { %37 = dma.vmem_to_hbm [thread:$0]  %s33_s12, 128, %s35_s15, [#allocation4]  }
   0x8   :  { %96 = dma.done.wait [#allocation4], 128  }
   0x9   :  { %97 = vsyncadd [#allocation4], 4294967168 }
   0xa   :  { %42 = vsyncpa [#allocation3], 1 }
   0xb   :  { %43 = vsyncpa [#allocation4], 1 }

</bundles_post_ra>
